<compile_context>
chip_gen: v6e
topology: v6e:2x2x1
jax: 0.10.0
libtpu: 0.0.40
codegen_flags: <defaults>
</compile_context>

<pallas_src>
import jax
import jax.numpy as jnp
from jax import lax
from jax.experimental import pallas as pl
from jax.experimental.pallas import tpu as pltpu

LANE = 128          # lane-dense width for attention / output logits
NEG_BIG = -1e30     # padded-column bias (exp -> exactly 0 in f32)


def _round_up(x, m):
    return ((x + m - 1) // m) * m


# -----------------------------------------------------------------------------
# Kernel: full decode in one invocation; time recurrence via lax.fori_loop.
# -----------------------------------------------------------------------------
def _attn_decoder_kernel(
    tok_ref,     # SMEM (T,) int32            token ids (scalar prefetch)
    emb_ref,     # VMEM (V, 1, H)             embedding table (row-gatherable)
    hid0_ref,    # VMEM (1, H)                initial hidden state
    enc_ref,     # VMEM (Lp, H)               encoder outputs (zero-padded rows)
    wemb_ref,    # VMEM (H, Lp+H)             emb RHS: [attn_emb | combine_emb]
    whid_ref,    # VMEM (H, Lp+Gp)            hid RHS: [attn_hid | Whh (r|z|n)]
    wx_ref,      # VMEM (H, Gp)               Wih (gates lane-stacked r|z|n)
    wca_ref,     # VMEM (H, H)                combine weight for attn_applied
    wout_ref,    # VMEM (H, Lp)               output projection
    b128_ref,    # VMEM (2, Lp)               row0=attn bias, row1=out bias (pad=-1e30)
    bg_ref,      # VMEM (2, Gp)               row0=b_ih, row1=b_hh (pad=0)
    bc_ref,      # VMEM (1, H)                combine bias
    out_ref,     # VMEM (T, 1, Lp)            per-step log-softmax (lane padded)
    attnw_ref,   # VMEM (T, 1, Lp)            per-step attention weights (padded)
    hlast_ref,   # VMEM (1, H)                final hidden state
):
    H = hid0_ref.shape[1]
    Lp = b128_ref.shape[1]
    Gp = bg_ref.shape[1]
    T = out_ref.shape[0]

    # Loop-invariant loads (hoisted; everything stays resident in vregs/VMEM).
    w_emb = wemb_ref[...]
    w_hid = whid_ref[...]
    w_x = wx_ref[...]
    w_out = wout_ref[...]
    b_attn = b128_ref[0:1, :]
    b_out = b128_ref[1:2, :]
    b_ih = bg_ref[0:1, :]
    b_hh = bg_ref[1:2, :]
    b_comb = bc_ref[...]

    # enc @ W_combine_attn hoisted out of the time loop (one dot per call):
    # attn_applied @ W_ca == attn_w @ (enc @ W_ca).
    enc_ca = jnp.dot(enc_ref[...], wca_ref[...],
                     preferred_element_type=jnp.float32)          # (Lp, H)

    def step(t, h):
        tok = tok_ref[t]
        # Embedding gather; dropout is eval-mode identity.
        # TODO(synk): training-mode dropout would need pltpu.prng_* in-kernel.
        emb = emb_ref[tok].astype(jnp.float32)                    # (1, H)

        # Fused RHS dots: emb -> [attn logits part | combine part],
        #                 hid -> [attn logits part | GRU gh (r|z|n)].
        pe = jnp.dot(emb, w_emb, preferred_element_type=jnp.float32)  # (1, Lp+H)
        ph = jnp.dot(h, w_hid, preferred_element_type=jnp.float32)    # (1, Lp+Gp)

        # attn_weights = softmax(attn(cat([emb, hid])))  (exact divide)
        logits = pe[:, 0:Lp] + ph[:, 0:Lp] + b_attn              # padded lanes ~ -1e30
        m = jnp.max(logits, axis=1, keepdims=True)
        e = jnp.exp(logits - m)                                   # padded lanes -> 0
        attn_w = e / jnp.sum(e, axis=1, keepdims=True)            # sums to 1 exactly
        attnw_ref[t] = attn_w.astype(attnw_ref.dtype)

        # output = relu(attn_combine(cat([emb, attn_applied])))
        comb = (pe[:, Lp:Lp + H]
                + jnp.dot(attn_w, enc_ca, preferred_element_type=jnp.float32)
                + b_comb)
        x = jnp.maximum(comb, 0.0)                                # (1, H)

        # Single-step GRU, PyTorch gate order r|z|n, gates lane-stacked.
        gi = jnp.dot(x, w_x, preferred_element_type=jnp.float32) + b_ih   # (1, Gp)
        gh = ph[:, Lp:Lp + Gp] + b_hh                                     # (1, Gp)
        rz = jax.nn.sigmoid(gi[:, 0:2 * H] + gh[:, 0:2 * H])      # one EUP region
        r = rz[:, 0:H]
        z = rz[:, H:2 * H]
        n = jnp.tanh(gi[:, 2 * H:3 * H] + r * gh[:, 2 * H:3 * H])
        h_new = (1.0 - z) * n + z * h                             # (1, H)

        # output = log_softmax(out(h_new))   (padded lanes killed by -1e30 bias)
        lo = jnp.dot(h_new, w_out, preferred_element_type=jnp.float32) + b_out
        mo = jnp.max(lo, axis=1, keepdims=True)
        lse = jnp.log(jnp.sum(jnp.exp(lo - mo), axis=1, keepdims=True)) + mo
        out_ref[t] = (lo - lse).astype(out_ref.dtype)
        return h_new

    h_final = lax.fori_loop(0, T, step, hid0_ref[...].astype(jnp.float32))
    hlast_ref[...] = h_final.astype(hlast_ref.dtype)


# -----------------------------------------------------------------------------
# Parameter init (PyTorch-native shapes) and one-time packing.
# -----------------------------------------------------------------------------
def init_params(key, input_size, hidden_size, output_size, max_length):
    """Deterministic init; PyTorch-native (out_features, in_features) shapes."""
    H, L, O = hidden_size, max_length, output_size
    ks = jax.random.split(key, 10)
    s = 0.1
    return {
        # Spec uses nn.Embedding(hidden_size, hidden_size): table is (H, H).
        "embedding": s * jax.random.normal(ks[0], (H, H), jnp.float32),
        "attn_w":    s * jax.random.normal(ks[1], (L, 2 * H), jnp.float32),
        "attn_b":    s * jax.random.normal(ks[2], (L,), jnp.float32),
        "comb_w":    s * jax.random.normal(ks[3], (H, 2 * H), jnp.float32),
        "comb_b":    s * jax.random.normal(ks[4], (H,), jnp.float32),
        "gru_wih":   s * jax.random.normal(ks[5], (3 * H, H), jnp.float32),
        "gru_whh":   s * jax.random.normal(ks[6], (3 * H, H), jnp.float32),
        "gru_bih":   s * jax.random.normal(ks[7], (3 * H,), jnp.float32),
        "gru_bhh":   s * jax.random.normal(ks[8], (3 * H,), jnp.float32),
        "out_w":     s * jax.random.normal(ks[9], (O, H), jnp.float32),
        "out_b":     jnp.zeros((O,), jnp.float32),
    }


def pack_params(params, max_length):
    """One-time prepack: (in,out) layout, lane-stacked fused RHS slabs."""
    H = params["embedding"].shape[1]
    L = max_length
    O = params["out_w"].shape[0]
    Lp = _round_up(max(L, O, LANE), LANE)
    Gp = _round_up(3 * H, LANE)

    def pad_lanes(w, width):
        return jnp.pad(w, ((0, 0), (0, width - w.shape[1])))

    # attn: Linear(2H -> L); columns 0:H act on emb, H:2H on hidden.
    w_attn_emb = pad_lanes(params["attn_w"][:, :H].T, Lp)        # (H, Lp)
    w_attn_hid = pad_lanes(params["attn_w"][:, H:].T, Lp)        # (H, Lp)
    # attn_combine: Linear(2H -> H); columns 0:H act on emb, H:2H on attn_applied.
    w_comb_emb = params["comb_w"][:, :H].T                       # (H, H)
    w_comb_att = params["comb_w"][:, H:].T                       # (H, H)
    # GRU: gates r|z|n lane-stacked, zero-padded to Gp lanes.
    w_ih = pad_lanes(params["gru_wih"].T, Gp)                    # (H, Gp)
    w_hh = pad_lanes(params["gru_whh"].T, Gp)                    # (H, Gp)
    # Output projection.
    w_out = pad_lanes(params["out_w"].T, Lp)                     # (H, Lp)

    # Fused RHS slabs (one dot per LHS per step):
    w_emb_slab = jnp.concatenate([w_attn_emb, w_comb_emb], axis=1)   # (H, Lp+H)
    w_hid_slab = jnp.concatenate([w_attn_hid, w_hh], axis=1)         # (H, Lp+Gp)

    b_attn = jnp.full((Lp,), NEG_BIG, jnp.float32).at[:L].set(params["attn_b"])
    b_out = jnp.full((Lp,), NEG_BIG, jnp.float32).at[:O].set(params["out_b"])
    b128 = jnp.stack([b_attn, b_out], axis=0)                         # (2, Lp)
    bg = jnp.stack([jnp.pad(params["gru_bih"], (0, Gp - 3 * H)),
                    jnp.pad(params["gru_bhh"], (0, Gp - 3 * H))], axis=0)  # (2, Gp)
    bc = params["comb_b"].reshape(1, H)

    # Embedding table: one (1, H) tile per row -> dynamic leading-dim gather.
    # TODO(synk): for a large vocab keep the table in HBM (pl.ANY) + per-row DMA.
    emb = params["embedding"].reshape(H, 1, H)

    return {"emb": emb, "w_emb": w_emb_slab, "w_hid": w_hid_slab, "w_x": w_ih,
            "w_ca": w_comb_att, "w_out": w_out, "b128": b128, "bg": bg, "bc": bc,
            "H": H, "L": L, "O": O, "Lp": Lp, "Gp": Gp}


# -----------------------------------------------------------------------------
# Wrappers
# -----------------------------------------------------------------------------
def attn_decoder_decode(packed, tokens, hidden, encoder_outputs):
    """
    Fused multi-step decode (teacher-forced token ids), one pallas_call.
      tokens:          (T,) int32
      hidden:          (1, 1, H)
      encoder_outputs: (L, H)
    Returns: (log_probs (T, O), final_hidden (1, 1, H), attn_weights (T, L)).
    Per-step semantics match AttnDecoderRNN.forward (dropout in eval mode).
    """
    H, L, O = packed["H"], packed["L"], packed["O"]
    Lp, Gp = packed["Lp"], packed["Gp"]
    T = int(tokens.shape[0])
    V = packed["emb"].shape[0]

    tokens = jnp.asarray(tokens, jnp.int32)
    hid0 = hidden.reshape(1, H).astype(jnp.float32)
    enc_pad = jnp.pad(encoder_outputs.astype(jnp.float32), ((0, Lp - L), (0, 0)))

    c2 = lambda i, tok: (0, 0)
    c3 = lambda i, tok: (0, 0, 0)

    grid_spec = pltpu.PrefetchScalarGridSpec(
        num_scalar_prefetch=1,          # token ids -> SMEM
        grid=(1,),                      # whole decode in one kernel invocation
        in_specs=[
            pl.BlockSpec((V, 1, H), c3),          # embedding table (resident)
            pl.BlockSpec((1, H), c2),             # initial hidden
            pl.BlockSpec((Lp, H), c2),            # encoder outputs (padded rows)
            pl.BlockSpec((H, Lp + H), c2),        # fused emb RHS
            pl.BlockSpec((H, Lp + Gp), c2),       # fused hidden RHS
            pl.BlockSpec((H, Gp), c2),            # W_ih (gates lane-stacked)
            pl.BlockSpec((H, H), c2),             # W_combine_attn
            pl.BlockSpec((H, Lp), c2),            # W_out
            pl.BlockSpec((2, Lp), c2),            # attn/out biases
            pl.BlockSpec((2, Gp), c2),            # GRU biases
            pl.BlockSpec((1, H), c2),             # combine bias
        ],
        out_specs=(
            pl.BlockSpec((T, 1, Lp), c3),         # log-softmax (lane padded)
            pl.BlockSpec((T, 1, Lp), c3),         # attention weights (padded)
            pl.BlockSpec((1, H), c2),             # final hidden
        ),
    )

    out_pad, attnw_pad, h_last = pl.pallas_call(
        _attn_decoder_kernel,
        out_shape=(
            jax.ShapeDtypeStruct((T, 1, Lp), jnp.float32),
            jax.ShapeDtypeStruct((T, 1, Lp), jnp.float32),
            jax.ShapeDtypeStruct((1, H), jnp.float32),
        ),
        grid_spec=grid_spec,
        compiler_params=pltpu.CompilerParams(
            dimension_semantics=("arbitrary",)),
    )(tokens, packed["emb"], hid0, enc_pad,
      packed["w_emb"], packed["w_hid"], packed["w_x"], packed["w_ca"],
      packed["w_out"], packed["b128"], packed["bg"], packed["bc"])

    return out_pad[:, 0, :O], h_last.reshape(1, 1, H), attnw_pad[:, 0, :L]


def attn_decoder_forward(packed, input_token, hidden, encoder_outputs):
    """Single decoder step (== PyTorch forward): returns ((1,O), (1,1,H), (1,L))."""
    tokens = jnp.asarray(input_token, jnp.int32).reshape(1)
    outs, h_new, aws = attn_decoder_decode(packed, tokens, hidden, encoder_outputs)
    return outs, h_new, aws


# -----------------------------------------------------------------------------
# Pure-JAX reference (for correctness check)
# -----------------------------------------------------------------------------
def reference_step(params, token, hidden, encoder_outputs):
    H = hidden.shape[-1]
    emb = params["embedding"][token].reshape(1, H)
    hid = hidden.reshape(1, H)
    attn_w = jax.nn.softmax(
        jnp.concatenate([emb, hid], axis=1) @ params["attn_w"].T + params["attn_b"],
        axis=1)
    attn_applied = attn_w @ encoder_outputs
    comb = (jnp.concatenate([emb, attn_applied], axis=1) @ params["comb_w"].T
            + params["comb_b"])
    x = jnp.maximum(comb, 0.0)
    gi = x @ params["gru_wih"].T + params["gru_bih"]
    gh = hid @ params["gru_whh"].T + params["gru_bhh"]
    r = jax.nn.sigmoid(gi[:, :H] + gh[:, :H])
    z = jax.nn.sigmoid(gi[:, H:2 * H] + gh[:, H:2 * H])
    n = jnp.tanh(gi[:, 2 * H:] + r * gh[:, 2 * H:])
    h_new = (1.0 - z) * n + z * hid
    out = jax.nn.log_softmax(h_new @ params["out_w"].T + params["out_b"], axis=1)
    return out, h_new.reshape(1, 1, H), attn_w


# -----------------------------------------------------------------------------
if __name__ == "__main__":
    input_size = 20
    hidden_size = 32
    output_size = 16
    max_length = 8
    T = 5

    key = jax.random.PRNGKey(0)
    kp, kh, ke, kt = jax.random.split(key, 4)

    params = init_params(kp, input_size, hidden_size, output_size, max_length)
    packed = pack_params(params, max_length)           # one-time prepack

    hidden = 0.1 * jax.random.normal(kh, (1, 1, hidden_size), jnp.float32)
    encoder_outputs = 0.1 * jax.random.normal(ke, (max_length, hidden_size), jnp.float32)
    tokens = jax.random.randint(kt, (T,), 0, hidden_size, jnp.int32)

    # single step (matches PyTorch forward signature)
    out1, h1, aw1 = attn_decoder_forward(packed, tokens[0], hidden, encoder_outputs)
    # fused multi-step decode (single pallas_call, weights resident across steps)
    outs, h_last, aws = attn_decoder_decode(packed, tokens, hidden, encoder_outputs)
    jax.block_until_ready((out1, h1, aw1, outs, h_last, aws))

    # pure-JAX reference loop
    ref_outs, ref_aws = [], []
    h = hidden
    for t in range(T):
        o, h, a = reference_step(params, tokens[t], h, encoder_outputs)
        ref_outs.append(o)
        ref_aws.append(a)
    ref_outs = jnp.concatenate(ref_outs, axis=0)
    ref_aws = jnp.concatenate(ref_aws, axis=0)

    assert out1.shape == (1, output_size)
    assert h1.shape == (1, 1, hidden_size)
    assert aw1.shape == (1, max_length)
    assert outs.shape == (T, output_size)
    assert aws.shape == (T, max_length)
    assert h_last.shape == (1, 1, hidden_size)

    assert jnp.allclose(out1, ref_outs[0:1], atol=2e-3), "single-step log-probs mismatch"
    assert jnp.allclose(outs, ref_outs, atol=2e-3), "fused log-probs mismatch"
    assert jnp.allclose(aws, ref_aws, atol=2e-3), "attention weights mismatch"
    assert jnp.allclose(h_last, h, atol=2e-3), "final hidden mismatch"
    assert jnp.allclose(jnp.sum(jnp.exp(outs), axis=1), jnp.ones((T,)), atol=1e-3)
    assert jnp.allclose(jnp.sum(aws, axis=1), jnp.ones((T,)), atol=1e-3)

    print("KERNEL_OK")
</pallas_src>

<mosaic_0001>
module attributes {stable_mosaic.version = 11 : i64} {
  func.func @_attn_decoder_kernel(%arg0: i32, %arg1: memref<1xi32, #tpu.memory_space<smem>>, %arg2: memref<32x1x32xf32, #tpu.memory_space<vmem>>, %arg3: memref<1x32xf32, #tpu.memory_space<vmem>>, %arg4: memref<128x32xf32, #tpu.memory_space<vmem>>, %arg5: memref<32x160xf32, #tpu.memory_space<vmem>>, %arg6: memref<32x256xf32, #tpu.memory_space<vmem>>, %arg7: memref<32x128xf32, #tpu.memory_space<vmem>>, %arg8: memref<32x32xf32, #tpu.memory_space<vmem>>, %arg9: memref<32x128xf32, #tpu.memory_space<vmem>>, %arg10: memref<2x128xf32, #tpu.memory_space<vmem>>, %arg11: memref<2x128xf32, #tpu.memory_space<vmem>>, %arg12: memref<1x32xf32, #tpu.memory_space<vmem>>, %arg13: memref<1x1x128xf32, #tpu.memory_space<vmem>>, %arg14: memref<1x1x128xf32, #tpu.memory_space<vmem>>, %arg15: memref<1x32xf32, #tpu.memory_space<vmem>>) attributes {dimension_semantics = [#tpu.dimension_semantics<arbitrary>], iteration_bounds = array<i64: 1>, scalar_prefetch = 1 : i64, scratch_operands = 0 : i64, tpu.core_type = #tpu.core_type<tc>, window_params = [{pipeline_mode = #tpu.pipeline_mode<synchronous>, transform_indices = @transform_0, window_bounds = array<i64: 32, 1, 32>}, {pipeline_mode = #tpu.pipeline_mode<synchronous>, transform_indices = @transform_1, window_bounds = array<i64: 1, 32>}, {pipeline_mode = #tpu.pipeline_mode<synchronous>, transform_indices = @transform_2, window_bounds = array<i64: 128, 32>}, {pipeline_mode = #tpu.pipeline_mode<synchronous>, transform_indices = @transform_3, window_bounds = array<i64: 32, 160>}, {pipeline_mode = #tpu.pipeline_mode<synchronous>, transform_indices = @transform_4, window_bounds = array<i64: 32, 256>}, {pipeline_mode = #tpu.pipeline_mode<synchronous>, transform_indices = @transform_5, window_bounds = array<i64: 32, 128>}, {pipeline_mode = #tpu.pipeline_mode<synchronous>, transform_indices = @transform_6, window_bounds = array<i64: 32, 32>}, {pipeline_mode = #tpu.pipeline_mode<synchronous>, transform_indices = @transform_7, window_bounds = array<i64: 32, 128>}, {pipeline_mode = #tpu.pipeline_mode<synchronous>, transform_indices = @transform_8, window_bounds = array<i64: 2, 128>}, {pipeline_mode = #tpu.pipeline_mode<synchronous>, transform_indices = @transform_9, window_bounds = array<i64: 2, 128>}, {pipeline_mode = #tpu.pipeline_mode<synchronous>, transform_indices = @transform_10, window_bounds = array<i64: 1, 32>}, {pipeline_mode = #tpu.pipeline_mode<synchronous>, transform_indices = @transform_11, window_bounds = array<i64: 1, 1, 128>}, {pipeline_mode = #tpu.pipeline_mode<synchronous>, transform_indices = @transform_12, window_bounds = array<i64: 1, 1, 128>}, {pipeline_mode = #tpu.pipeline_mode<synchronous>, transform_indices = @transform_13, window_bounds = array<i64: 1, 32>}]} {
    %c0 = arith.constant 0 : index
    %c0_0 = arith.constant 0 : index
    %0 = vector.load %arg5[%c0, %c0_0] : memref<32x160xf32, #tpu.memory_space<vmem>>, vector<32x160xf32>
    %c0_1 = arith.constant 0 : index
    %c0_2 = arith.constant 0 : index
    %1 = vector.load %arg6[%c0_1, %c0_2] : memref<32x256xf32, #tpu.memory_space<vmem>>, vector<32x256xf32>
    %c0_3 = arith.constant 0 : index
    %c0_4 = arith.constant 0 : index
    %2 = vector.load %arg7[%c0_3, %c0_4] : memref<32x128xf32, #tpu.memory_space<vmem>>, vector<32x128xf32>
    %c0_5 = arith.constant 0 : index
    %c0_6 = arith.constant 0 : index
    %3 = vector.load %arg9[%c0_5, %c0_6] : memref<32x128xf32, #tpu.memory_space<vmem>>, vector<32x128xf32>
    %c0_7 = arith.constant 0 : index
    %c0_8 = arith.constant 0 : index
    %4 = vector.load %arg10[%c0_7, %c0_8] : memref<2x128xf32, #tpu.memory_space<vmem>>, vector<1x128xf32>
    %c1 = arith.constant 1 : index
    %c0_9 = arith.constant 0 : index
    %5 = vector.load %arg10[%c1, %c0_9] : memref<2x128xf32, #tpu.memory_space<vmem>>, vector<1x128xf32>
    %c0_10 = arith.constant 0 : index
    %c0_11 = arith.constant 0 : index
    %6 = vector.load %arg11[%c0_10, %c0_11] : memref<2x128xf32, #tpu.memory_space<vmem>>, vector<1x128xf32>
    %c1_12 = arith.constant 1 : index
    %c0_13 = arith.constant 0 : index
    %7 = vector.load %arg11[%c1_12, %c0_13] : memref<2x128xf32, #tpu.memory_space<vmem>>, vector<1x128xf32>
    %c0_14 = arith.constant 0 : index
    %c0_15 = arith.constant 0 : index
    %8 = vector.load %arg12[%c0_14, %c0_15] : memref<1x32xf32, #tpu.memory_space<vmem>>, vector<1x32xf32>
    %c0_16 = arith.constant 0 : index
    %c0_17 = arith.constant 0 : index
    %9 = vector.load %arg4[%c0_16, %c0_17] : memref<128x32xf32, #tpu.memory_space<vmem>>, vector<128x32xf32>
    %c0_18 = arith.constant 0 : index
    %c0_19 = arith.constant 0 : index
    %10 = vector.load %arg8[%c0_18, %c0_19] : memref<32x32xf32, #tpu.memory_space<vmem>>, vector<32x32xf32>
    %cst = arith.constant dense<0.000000e+00> : vector<128x32xf32>
    %11 = tpu.matmul %9, %10, %cst {dimension_numbers = #tpu.dot_dimension_numbers<[1], [0], [0], [1], [0, 0, 1, 1], [], []>} : vector<128x32xf32>, vector<32x32xf32>, vector<128x32xf32> -> vector<128x32xf32>
    %c0_20 = arith.constant 0 : index
    %c0_21 = arith.constant 0 : index
    %12 = vector.load %arg3[%c0_20, %c0_21] : memref<1x32xf32, #tpu.memory_space<vmem>>, vector<1x32xf32>
    %c0_i32 = arith.constant 0 : i32
    %13 = arith.index_cast %c0_i32 : i32 to index
    %14 = memref.load %arg1[%13] : memref<1xi32, #tpu.memory_space<smem>>
    %15 = arith.index_cast %14 : i32 to index
    %c0_22 = arith.constant 0 : index
    %c0_23 = arith.constant 0 : index
    %16 = vector.load %arg2[%15, %c0_22, %c0_23] : memref<32x1x32xf32, #tpu.memory_space<vmem>>, vector<1x1x32xf32>
    %17 = vector.shape_cast %16 : vector<1x1x32xf32> to vector<1x32xf32>
    %cst_24 = arith.constant dense<0.000000e+00> : vector<1x160xf32>
    %18 = tpu.matmul %17, %0, %cst_24 {dimension_numbers = #tpu.dot_dimension_numbers<[1], [0], [0], [1], [0, 0, 1, 1], [], []>} : vector<1x32xf32>, vector<32x160xf32>, vector<1x160xf32> -> vector<1x160xf32>
    %cst_25 = arith.constant dense<0.000000e+00> : vector<1x256xf32>
    %19 = tpu.matmul %12, %1, %cst_25 {dimension_numbers = #tpu.dot_dimension_numbers<[1], [0], [0], [1], [0, 0, 1, 1], [], []>} : vector<1x32xf32>, vector<32x256xf32>, vector<1x256xf32> -> vector<1x256xf32>
    %20 = vector.extract_strided_slice %18 {offsets = [0, 0], sizes = [1, 128], strides = [1, 1]} : vector<1x160xf32> to vector<1x128xf32>
    %21 = vector.extract_strided_slice %19 {offsets = [0, 0], sizes = [1, 128], strides = [1, 1]} : vector<1x256xf32> to vector<1x128xf32>
    %22 = arith.addf %20, %21 : vector<1x128xf32>
    %23 = arith.addf %22, %4 : vector<1x128xf32>
    %cst_26 = arith.constant dense<0xFF800000> : vector<1xf32>
    %24 = vector.multi_reduction <maximumf>, %23, %cst_26 [1] : vector<1x128xf32> to vector<1xf32>
    %25 = vector.shape_cast %24 : vector<1xf32> to vector<1x1xf32>
    %26 = vector.broadcast %25 : vector<1x1xf32> to vector<1x128xf32>
    %27 = arith.subf %23, %26 : vector<1x128xf32>
    %28 = math.exp %27 : vector<1x128xf32>
    %cst_27 = arith.constant dense<0.000000e+00> : vector<1xf32>
    %29 = vector.multi_reduction <add>, %28, %cst_27 [1] : vector<1x128xf32> to vector<1xf32>
    %30 = vector.shape_cast %29 : vector<1xf32> to vector<1x1xf32>
    %31 = vector.broadcast %30 : vector<1x1xf32> to vector<1x128xf32>
    %32 = arith.divf %28, %31 : vector<1x128xf32>
    %33 = arith.index_cast %c0_i32 : i32 to index
    %c0_28 = arith.constant 0 : index
    %c0_29 = arith.constant 0 : index
    %34 = vector.load %arg14[%33, %c0_28, %c0_29] : memref<1x1x128xf32, #tpu.memory_space<vmem>>, vector<1x1x128xf32>
    %35 = vector.shape_cast %34 : vector<1x1x128xf32> to vector<1x128xf32>
    %36 = vector.shape_cast %32 : vector<1x128xf32> to vector<1x1x128xf32>
    tpu.vector_store %arg14[%33, %c0_28, %c0_29], %36 {strides = array<i32>} : memref<1x1x128xf32, #tpu.memory_space<vmem>>, vector<1x1x128xf32>,
    %37 = vector.extract_strided_slice %18 {offsets = [0, 128], sizes = [1, 32], strides = [1, 1]} : vector<1x160xf32> to vector<1x32xf32>
    %cst_30 = arith.constant dense<0.000000e+00> : vector<1x32xf32>
    %38 = tpu.matmul %32, %11, %cst_30 {dimension_numbers = #tpu.dot_dimension_numbers<[1], [0], [0], [1], [0, 0, 1, 1], [], []>} : vector<1x128xf32>, vector<128x32xf32>, vector<1x32xf32> -> vector<1x32xf32>
    %39 = arith.addf %37, %38 : vector<1x32xf32>
    %40 = arith.addf %39, %8 : vector<1x32xf32>
    %cst_31 = arith.constant 0.000000e+00 : f32
    %41 = vector.broadcast %cst_31 : f32 to vector<1x32xf32>
    %42 = arith.maximumf %40, %41 : vector<1x32xf32>
    %cst_32 = arith.constant dense<0.000000e+00> : vector<1x128xf32>
    %43 = tpu.matmul %42, %2, %cst_32 {dimension_numbers = #tpu.dot_dimension_numbers<[1], [0], [0], [1], [0, 0, 1, 1], [], []>} : vector<1x32xf32>, vector<32x128xf32>, vector<1x128xf32> -> vector<1x128xf32>
    %44 = arith.addf %43, %6 : vector<1x128xf32>
    %45 = vector.extract_strided_slice %19 {offsets = [0, 128], sizes = [1, 128], strides = [1, 1]} : vector<1x256xf32> to vector<1x128xf32>
    %46 = arith.addf %45, %7 : vector<1x128xf32>
    %47 = vector.extract_strided_slice %44 {offsets = [0, 0], sizes = [1, 64], strides = [1, 1]} : vector<1x128xf32> to vector<1x64xf32>
    %48 = vector.extract_strided_slice %46 {offsets = [0, 0], sizes = [1, 64], strides = [1, 1]} : vector<1x128xf32> to vector<1x64xf32>
    %49 = arith.addf %47, %48 : vector<1x64xf32>
    %50 = arith.negf %49 : vector<1x64xf32>
    %51 = math.exp %50 : vector<1x64xf32>
    %cst_33 = arith.constant 1.000000e+00 : f32
    %52 = vector.broadcast %cst_33 : f32 to vector<1x64xf32>
    %53 = arith.addf %52, %51 : vector<1x64xf32>
    %54 = arith.divf %52, %53 : vector<1x64xf32>
    %55 = vector.extract_strided_slice %54 {offsets = [0, 0], sizes = [1, 32], strides = [1, 1]} : vector<1x64xf32> to vector<1x32xf32>
    %56 = vector.extract_strided_slice %54 {offsets = [0, 32], sizes = [1, 32], strides = [1, 1]} : vector<1x64xf32> to vector<1x32xf32>
    %57 = vector.extract_strided_slice %44 {offsets = [0, 64], sizes = [1, 32], strides = [1, 1]} : vector<1x128xf32> to vector<1x32xf32>
    %58 = vector.extract_strided_slice %46 {offsets = [0, 64], sizes = [1, 32], strides = [1, 1]} : vector<1x128xf32> to vector<1x32xf32>
    %59 = arith.mulf %55, %58 : vector<1x32xf32>
    %60 = arith.addf %57, %59 : vector<1x32xf32>
    %61 = math.tanh %60 : vector<1x32xf32>
    %cst_34 = arith.constant 1.000000e+00 : f32
    %62 = vector.broadcast %cst_34 : f32 to vector<1x32xf32>
    %63 = arith.subf %62, %56 : vector<1x32xf32>
    %64 = arith.mulf %63, %61 : vector<1x32xf32>
    %65 = arith.mulf %56, %12 : vector<1x32xf32>
    %66 = arith.addf %64, %65 : vector<1x32xf32>
    %cst_35 = arith.constant dense<0.000000e+00> : vector<1x128xf32>
    %67 = tpu.matmul %66, %3, %cst_35 {dimension_numbers = #tpu.dot_dimension_numbers<[1], [0], [0], [1], [0, 0, 1, 1], [], []>} : vector<1x32xf32>, vector<32x128xf32>, vector<1x128xf32> -> vector<1x128xf32>
    %68 = arith.addf %67, %5 : vector<1x128xf32>
    %cst_36 = arith.constant dense<0xFF800000> : vector<1xf32>
    %69 = vector.multi_reduction <maximumf>, %68, %cst_36 [1] : vector<1x128xf32> to vector<1xf32>
    %70 = vector.shape_cast %69 : vector<1xf32> to vector<1x1xf32>
    %71 = vector.broadcast %70 : vector<1x1xf32> to vector<1x128xf32>
    %72 = arith.subf %68, %71 : vector<1x128xf32>
    %73 = math.exp %72 : vector<1x128xf32>
    %cst_37 = arith.constant dense<0.000000e+00> : vector<1xf32>
    %74 = vector.multi_reduction <add>, %73, %cst_37 [1] : vector<1x128xf32> to vector<1xf32>
    %75 = vector.shape_cast %74 : vector<1xf32> to vector<1x1xf32>
    %76 = math.log %75 : vector<1x1xf32>
    %77 = arith.addf %76, %70 : vector<1x1xf32>
    %78 = vector.broadcast %77 : vector<1x1xf32> to vector<1x128xf32>
    %79 = arith.subf %68, %78 : vector<1x128xf32>
    %80 = arith.index_cast %c0_i32 : i32 to index
    %c0_38 = arith.constant 0 : index
    %c0_39 = arith.constant 0 : index
    %81 = vector.load %arg13[%80, %c0_38, %c0_39] : memref<1x1x128xf32, #tpu.memory_space<vmem>>, vector<1x1x128xf32>
    %82 = vector.shape_cast %81 : vector<1x1x128xf32> to vector<1x128xf32>
    %83 = vector.shape_cast %79 : vector<1x128xf32> to vector<1x1x128xf32>
    tpu.vector_store %arg13[%80, %c0_38, %c0_39], %83 {strides = array<i32>} : memref<1x1x128xf32, #tpu.memory_space<vmem>>, vector<1x1x128xf32>,
    %c1_i32 = arith.constant 1 : i32
    %c0_40 = arith.constant 0 : index
    %c0_41 = arith.constant 0 : index
    %84 = vector.load %arg15[%c0_40, %c0_41] : memref<1x32xf32, #tpu.memory_space<vmem>>, vector<1x32xf32>
    tpu.vector_store %arg15[%c0_40, %c0_41], %66 {strides = array<i32>} : memref<1x32xf32, #tpu.memory_space<vmem>>, vector<1x32xf32>,
    return
  }
  func.func @transform_0(%arg0: i32, %arg1: memref<1xi32, #tpu.memory_space<smem>>) -> (i32, i32, i32) {
    %c0_i32 = arith.constant 0 : i32
    %c0_i32_0 = arith.constant 0 : i32
    %c0_i32_1 = arith.constant 0 : i32
    %c0_i32_2 = arith.constant 0 : i32
    return %c0_i32, %c0_i32_0, %c0_i32_1 : i32, i32, i32
  }
  func.func @transform_1(%arg0: i32, %arg1: memref<1xi32, #tpu.memory_space<smem>>) -> (i32, i32) {
    %c0_i32 = arith.constant 0 : i32
    %c0_i32_0 = arith.constant 0 : i32
    %c0_i32_1 = arith.constant 0 : i32
    return %c0_i32, %c0_i32_0 : i32, i32
  }
  func.func @transform_2(%arg0: i32, %arg1: memref<1xi32, #tpu.memory_space<smem>>) -> (i32, i32) {
    %c0_i32 = arith.constant 0 : i32
    %c0_i32_0 = arith.constant 0 : i32
    %c0_i32_1 = arith.constant 0 : i32
    return %c0_i32, %c0_i32_0 : i32, i32
  }
  func.func @transform_3(%arg0: i32, %arg1: memref<1xi32, #tpu.memory_space<smem>>) -> (i32, i32) {
    %c0_i32 = arith.constant 0 : i32
    %c0_i32_0 = arith.constant 0 : i32
    %c0_i32_1 = arith.constant 0 : i32
    return %c0_i32, %c0_i32_0 : i32, i32
  }
  func.func @transform_4(%arg0: i32, %arg1: memref<1xi32, #tpu.memory_space<smem>>) -> (i32, i32) {
    %c0_i32 = arith.constant 0 : i32
    %c0_i32_0 = arith.constant 0 : i32
    %c0_i32_1 = arith.constant 0 : i32
    return %c0_i32, %c0_i32_0 : i32, i32
  }
  func.func @transform_5(%arg0: i32, %arg1: memref<1xi32, #tpu.memory_space<smem>>) -> (i32, i32) {
    %c0_i32 = arith.constant 0 : i32
    %c0_i32_0 = arith.constant 0 : i32
    %c0_i32_1 = arith.constant 0 : i32
    return %c0_i32, %c0_i32_0 : i32, i32
  }
  func.func @transform_6(%arg0: i32, %arg1: memref<1xi32, #tpu.memory_space<smem>>) -> (i32, i32) {
    %c0_i32 = arith.constant 0 : i32
    %c0_i32_0 = arith.constant 0 : i32
    %c0_i32_1 = arith.constant 0 : i32
    return %c0_i32, %c0_i32_0 : i32, i32
  }
  func.func @transform_7(%arg0: i32, %arg1: memref<1xi32, #tpu.memory_space<smem>>) -> (i32, i32) {
    %c0_i32 = arith.constant 0 : i32
    %c0_i32_0 = arith.constant 0 : i32
    %c0_i32_1 = arith.constant 0 : i32
    return %c0_i32, %c0_i32_0 : i32, i32
  }
  func.func @transform_8(%arg0: i32, %arg1: memref<1xi32, #tpu.memory_space<smem>>) -> (i32, i32) {
    %c0_i32 = arith.constant 0 : i32
    %c0_i32_0 = arith.constant 0 : i32
    %c0_i32_1 = arith.constant 0 : i32
    return %c0_i32, %c0_i32_0 : i32, i32
  }
  func.func @transform_9(%arg0: i32, %arg1: memref<1xi32, #tpu.memory_space<smem>>) -> (i32, i32) {
    %c0_i32 = arith.constant 0 : i32
    %c0_i32_0 = arith.constant 0 : i32
    %c0_i32_1 = arith.constant 0 : i32
    return %c0_i32, %c0_i32_0 : i32, i32
  }
  func.func @transform_10(%arg0: i32, %arg1: memref<1xi32, #tpu.memory_space<smem>>) -> (i32, i32) {
    %c0_i32 = arith.constant 0 : i32
    %c0_i32_0 = arith.constant 0 : i32
    %c0_i32_1 = arith.constant 0 : i32
    return %c0_i32, %c0_i32_0 : i32, i32
  }
  func.func @transform_11(%arg0: i32, %arg1: memref<1xi32, #tpu.memory_space<smem>>) -> (i32, i32, i32) {
    %c0_i32 = arith.constant 0 : i32
    %c0_i32_0 = arith.constant 0 : i32
    %c0_i32_1 = arith.constant 0 : i32
    %c0_i32_2 = arith.constant 0 : i32
    return %c0_i32, %c0_i32_0, %c0_i32_1 : i32, i32, i32
  }
  func.func @transform_12(%arg0: i32, %arg1: memref<1xi32, #tpu.memory_space<smem>>) -> (i32, i32, i32) {
    %c0_i32 = arith.constant 0 : i32
    %c0_i32_0 = arith.constant 0 : i32
    %c0_i32_1 = arith.constant 0 : i32
    %c0_i32_2 = arith.constant 0 : i32
    return %c0_i32, %c0_i32_0, %c0_i32_1 : i32, i32, i32
  }
  func.func @transform_13(%arg0: i32, %arg1: memref<1xi32, #tpu.memory_space<smem>>) -> (i32, i32) {
    %c0_i32 = arith.constant 0 : i32
    %c0_i32_0 = arith.constant 0 : i32
    %c0_i32_1 = arith.constant 0 : i32
    return %c0_i32, %c0_i32_0 : i32, i32
  }
}

</mosaic_0001>

<bundles_post_ra>
// kernel: tpu_custom_call.1
= control target key start
LH: loop header
LB: loop body
LE: loop exit
PB: predicated region body
PF: predicated region fallthrough
CT: control target
= control target key end

     0   :  { %21 = vsyncpa [#allocation5], 0  ;;  %s1419_s0 = inlined_call_operand.<no memory space> [shape: s32[1], index: 0, kind: input, shape index: {}]   ;;  %s1420_s1 = inlined_call_operand.vmem [shape: f32[32,1,32], index: 1, kind: input, shape index: {}]   ;;  %s1421_s2 = inlined_call_operand.vmem [shape: f32[1,32], index: 2, kind: input, shape index: {}]   ;;  %s1422_s3 = inlined_call_operand.vmem [shape: f32[128,32], index: 3, kind: input, shape index: {}]   ;;  %s1423_s4 = inlined_call_operand.vmem [shape: f32[32,160], index: 4, kind: input, shape index: {}]   ;;  %s1424_s5 = inlined_call_operand.vmem [shape: f32[32,256], index: 5, kind: input, shape index: {}]   ;;  %s1425_s6 = inlined_call_operand.hbm [shape: f32[32,128], index: 6, kind: input, shape index: {}]   ;;  %s1426_s7 = inlined_call_operand.hbm [shape: f32[32,32], index: 7, kind: input, shape index: {}]   ;;  %s1427_s8 = inlined_call_operand.hbm [shape: f32[32,128], index: 8, kind: input, shape index: {}]   ;;  %s1428_s9 = inlined_call_operand.vmem [shape: f32[2,128], index: 9, kind: input, shape index: {}]   ;;  %s1429_s10 = inlined_call_operand.vmem [shape: f32[2,128], index: 10, kind: input, shape index: {}]   ;;  %s1430_s11 = inlined_call_operand.vmem [shape: f32[1,32], index: 11, kind: input, shape index: {}]   ;;  %s1431_s12 = inlined_call_operand.hbm [shape: f32[1,1,128], index: 12, kind: output, shape index: {0}]   ;;  %s1432_s13 = inlined_call_operand.hbm [shape: f32[1,1,128], index: 13, kind: output, shape index: {1}]   ;;  %s1433_s14 = inlined_call_operand.hbm [shape: f32[1,32], index: 14, kind: output, shape index: {2}]  }
   0x1   :  { %22 = vsyncpa [#allocation8], 0 }
   0x2   :  { %23 = vsyncpa [#allocation6], 0 }
   0x3   :  { %24 = vsyncpa [#allocation12], 0  ;;  %s1124_s29 = smov [#allocation7]   ;;  %s1125_s15 = smov [#allocation4]  }
   0x4   :  { %s52_s30 = sshll.u32 %s1124_s29, 4  ;;  %s40_s16 = sshll.u32 %s1125_s15, 4  ;;  %s53_s30 = int_to_ptr.vmem [resolvable:$true] %s52_s30  ;;  %s41_s16 = int_to_ptr.vmem [resolvable:$true] %s40_s16 }
   0x5   :  { %s1004_s17 = scalar_lea.vmem %s53_s30, 512  ;;  %p1009_p1 = scmp.lt.s32.totalorder %s53_s30, %s53_s30 }
   0x6   :  { %p1005_p0 = scmp.ne.s32.totalorder %s53_s30, %s1004_s17  ;;  %p1010_p2 = scmp.lt.s32.totalorder %s1004_s17, %s1004_s17 }
   0x8   :  { %p1011_p3 = por %p1010_p2, %p1009_p1 }
   0xa   :  { %p1012_p4 = pnand %p1011_p3, %p1005_p0 }
   0xc   :  { %1015 = shalt.err (!%p1012_p4)
}
   0xd   :  { %s1126_s18 = smov 128   ;;  %s1127_s19 = smov 8  }
   0xe   :  { %58 = dma.hbm_to_vmem [thread:$0]  %s1426_s7, 512, %s53_s30, [#allocation8], %s1126_s18, %s1126_s18, %s1127_s19  }
   0xf   :  { %s1024_s22 = scalar_lea.vmem %s41_s16, 512  ;;  %p1029_p6 = scmp.lt.s32.totalorder %s41_s16, %s41_s16 }
  0x10   :  { %p1025_p5 = scmp.ne.s32.totalorder %s41_s16, %s1024_s22  ;;  %p1030_p7 = scmp.lt.s32.totalorder %s1024_s22, %s1024_s22 }
  0x12   :  { %p1031_p8 = por %p1030_p7, %p1029_p6 }
  0x14   :  { %p1032_p9 = pnand %p1031_p8, %p1025_p5 }
  0x16   :  { %1035 = shalt.err (!%p1032_p9)
}
  0x17   :  { %46 = dma.hbm_to_vmem [thread:$0]  %s1425_s6, 512, %s41_s16, [#allocation5], %s1126_s18, %s1126_s18, %s1127_s19  }
  0x18   :  { %s1128_s25 = smov [#allocation9]  }
  0x19   :  { %s64_s26 = sshll.u32 %s1128_s25, 4  ;;  %s65_s26 = int_to_ptr.vmem [resolvable:$true] %s64_s26 }
  0x1a   :  { %s1044_s27 = scalar_lea.vmem %s65_s26, 512  ;;  %p1049_p11 = scmp.lt.s32.totalorder %s65_s26, %s65_s26 }
  0x1b   :  { %p1045_p10 = scmp.ne.s32.totalorder %s65_s26, %s1044_s27  ;;  %p1050_p12 = scmp.lt.s32.totalorder %s1044_s27, %s1044_s27 }
  0x1d   :  { %p1051_p13 = por %p1050_p12, %p1049_p11 }
  0x1f   :  { %p1052_p0 = pnand %p1051_p13, %p1045_p10 }
  0x21   :  { %1055 = shalt.err (!%p1052_p0)
}
  0x22   :  { %70 = dma.hbm_to_vmem [thread:$0]  %s1427_s8, 512, %s65_s26, [#allocation8], %s1126_s18, %s1126_s18, %s1127_s19  }
  0x23   :  { %1116 = dma.done.wait [#allocation5], 512  }
  0x24   :  { %1117 = vsyncadd [#allocation5], 4294966784 }
  0x25   :  { %1118 = dma.done.wait [#allocation8], 1024  }
  0x26   :  { %1119 = vsyncadd [#allocation8], 4294966272  ;;  %v1129_v0 = vmov 0.0   ;;  %v93_v1 = vld [vmem:[%s1423_s4 + $0x38] sm:$0xff]  ;;  %v92_v2 = vld [vmem:[%s1423_s4 + $0x30] sm:$0xff]  ;;  %s331_s27 = scalar_lea.vmem %s1420_s1, %s1419_s0  ;;  %vm135_vm0 = vcmask 261120  }
  0x27   :  { %400 = vmatprep.mubr.f32.mxu1 %v1129_v0  ;;  %v91_v3 = vld [vmem:[%s1423_s4 + $0x28] sm:$0xff]  ;;  %360 = vmatprep.subr.mxu1 %v93_v1  ;;  %v90_v4 = vld [vmem:[%s1423_s4 + $0x20] sm:$0xff]  ;;  %v89_v5 = vld [vmem:[%s1423_s4 + $0x18] sm:$0xff]  ;;  %vm483_vm1 = vcmask 1040384   ;;  %vm1131_vm2 = vmmov 0   ;;  %vm766_vm3 = vcmask 253952  }
  0x28   :  { %361 = vmatpush1.msra.mxu1 %v92_v2  ;;  %v88_v6 = vld [vmem:[%s1423_s4 + $0x10] sm:$0xff]  ;;  %v87_v7 = vld [vmem:[%s1423_s4 + $0x8] sm:$0xff]  ;;  %v86_v8 = vld [vmem:[%s1423_s4] sm:$0xff]  ;;  %s1134_s22 = smov [#allocation11]  }
  0x29   :  { %362 = vmatprep.subr.mxu1 %v91_v3  ;;  %v332_v9 = vld [vmem:[%s331_s27] sm:$0x1]  ;;  %v101_v10 = vld [vmem:[%s1424_s5 + $0x38] sm:$0xff]  ;;  %v100_v11 = vld [vmem:[%s1424_s5 + $0x30] sm:$0xff]  ;;  %s784_s23 = sshll.u32 %s1134_s22, 4  ;;  %s785_s23 = int_to_ptr.vmem [resolvable:$true] %s784_s23 }
  0x2a   :  { %363 = vmatpush1.msra.mxu1 %v90_v4  ;;  %v99_v12 = vld [vmem:[%s1424_s5 + $0x28] sm:$0xff]  ;;  %v98_v13 = vld [vmem:[%s1424_s5 + $0x20] sm:$0xff]  ;;  %v97_v14 = vld [vmem:[%s1424_s5 + $0x18] sm:$0xff]  ;;  %s1056_s24 = scalar_lea.vmem %s785_s23, 16  ;;  %p1061_p2 = scmp.lt.s32.totalorder %s785_s23, %s785_s23 }
  0x2b   :  { %364 = vmatprep.subr.mxu1 %v89_v5  ;;  %v96_v15 = vld [vmem:[%s1424_s5 + $0x10] sm:$0xff]  ;;  %v95_v16 = vld [vmem:[%s1424_s5 + $0x8] sm:$0xff]  ;;  %v94_v17 = vld [vmem:[%s1424_s5] sm:$0xff]  ;;  %p1057_p1 = scmp.ne.s32.totalorder %s785_s23, %s1056_s24 }
  0x2c   :  { %365 = vmatpush1.msra.mxu1 %v88_v6  ;;  %v1281_v18 = vld [vmem:[%s1421_s2] sm:$0x1]  ;;  %v134_v19 = vld [vmem:[#allocation7 + $0x18] sm:$0xff]  ;;  %v133_v20 = vld [vmem:[#allocation7 + $0x10] sm:$0xff] }
  0x2d   :  { %366 = vmatprep.subr.mxu1 %v87_v7  ;;  %880 = vmatprep.subr.mxu0 %v134_v19  ;;  %v132_v21 = vld [vmem:[#allocation7 + $0x8] sm:$0xff]  ;;  %v131_v22 = vld [vmem:[#allocation7] sm:$0xff]  ;;  %v117_v25 = vld [vmem:[%s1422_s3 + $0x10] sm:$0xff] }
  0x2e   :  { %367 = vmatpush1.msra.mxu1 %v86_v8  ;;  %881 = vmatpush3.msra.mxu0 %v134_v19  ;;  %v115_v23 = vld [vmem:[%s1422_s3] sm:$0xff]  ;;  %v116_v24 = vld [vmem:[%s1422_s3 + $0x8] sm:$0xff]  ;;  %v118_v26 = vld [vmem:[%s1422_s3 + $0x18] sm:$0xff] }
  0x2f   :  { %828 = vmatmul.mubr.msk.f32.vlgmr.msra.gmra.mxu1 %vm135_vm0, %v332_v9  ;;  %434 = vmatprep.subr.mxu1 %v101_v10  ;;  %v119_v27 = vld [vmem:[%s1422_s3 + $0x20] sm:$0xff]  ;;  %v120_v28 = vld [vmem:[%s1422_s3 + $0x28] sm:$0xff]  ;;  %v121_v29 = vld [vmem:[%s1422_s3 + $0x30] sm:$0xff] }
  0x30   :  { %435 = vmatpush1.msra.mxu1 %v100_v11  ;;  %474 = vmatprep.mubr.f32.mxu1 %v1129_v0  ;;  %v122_v30 = vld [vmem:[%s1422_s3 + $0x38] sm:$0xff]  ;;  %v123_v31 = vld [vmem:[%s1422_s3 + $0x40] sm:$0xff]  ;;  %v124_v32 = vld [vmem:[%s1422_s3 + $0x48] sm:$0xff] }
  0x31   :  { %436 = vmatprep.subr.mxu1 %v99_v12  ;;  %882 = vmatprep.subr.mxu0 %v133_v20  ;;  %v125_v33 = vld [vmem:[%s1422_s3 + $0x50] sm:$0xff]  ;;  %v126_v34 = vld [vmem:[%s1422_s3 + $0x58] sm:$0xff]  ;;  %v127_v35 = vld [vmem:[%s1422_s3 + $0x60] sm:$0xff] }
  0x32   :  { %437 = vmatpush1.msra.mxu1 %v98_v13  ;;  %883 = vmatpush3.msra.mxu0 %v133_v20  ;;  %v128_v36 = vld [vmem:[%s1422_s3 + $0x68] sm:$0xff]  ;;  %v129_v37 = vld [vmem:[%s1422_s3 + $0x70] sm:$0xff]  ;;  %v130_v38 = vld [vmem:[%s1422_s3 + $0x78] sm:$0xff]  ;;  %s1130_s3 = smov 64  }
  0x33   :  { %438 = vmatprep.subr.mxu1 %v97_v14  ;;  %884 = vmatprep.subr.mxu0 %v132_v21  ;;  %v113_v42 = vld [vmem:[%s1429_s10 + $0x1] sm:$0x1]  ;;  %v110_v43 = vld [vmem:[%s1428_s9] sm:$0x1]  ;;  %v105_v10 = vld [vmem:[#allocation4 + $0x18] sm:$0xff] }
  0x34   :  { %439 = vmatpush1.msra.mxu1 %v96_v15  ;;  %885 = vmatpush3.msra.mxu0 %v132_v21  ;;  %v104_v11 = vld [vmem:[#allocation4 + $0x10] sm:$0xff]  ;;  %v103_v12 = vld [vmem:[#allocation4 + $0x8] sm:$0xff]  ;;  %v102_v13 = vld [vmem:[#allocation4] sm:$0xff] }
  0x35   :  { %440 = vmatprep.subr.mxu1 %v95_v16  ;;  %886 = vmatprep.subr.mxu0 %v131_v22  ;;  %v114_v14 = vld [vmem:[%s1430_s11] sm:$0x1]  ;;  %s1133_s11 = smov 96  }
  0x36   :  { %441 = vmatpush1.msra.mxu1 %v94_v17  ;;  %888 = vmatprep.mubr.msk.f32.mxu0 %vm135_vm0, %v115_v23  ;;  %v112_v21 = vld [vmem:[%s1429_s10] sm:$0x1]  ;;  %s1132_s10 = smov 32  }
  0x37   :  { %829 = vmatmul.mubr.msk.f32.vlgmr.msra.gmra.mxu1 %vm135_vm0, %v1281_v18  ;;  %947 = vmatprep.subr.mxu1 %v1129_v0 }
  0x38   :  { %887 = vmatpush3.msra.mxu0 %v131_v22  ;;  %955 = vmatprep.mubr.msk.f32.mxu1 %vm1131_vm2, %v1129_v0 }
  0x39   :  { %889 = vmatmul.mubr.msk.f32.vlgmr.msra.gmra.mxu0 %vm135_vm0, %v116_v24  ;;  %912 = vmatprep.subr.mxu0 %v1129_v0 }
  0x3a   :  { %891 = vmatprep.mubr.msk.f32.mxu0 %vm135_vm0, %v117_v25  ;;  %948 = vmatpush3.msra.mxu1 %v105_v10 }
  0x3b   :  { %949 = vmatprep.subr.mxu1 %v1129_v0 }
  0x3c   :  { %950 = vmatpush3.msra.mxu1 %v104_v11 }
  0x3d   :  { %892 = vmatmul.mubr.msk.f32.gmra.mxu0 %vm135_vm0, %v118_v26  ;;  %951 = vmatprep.subr.mxu1 %v1129_v0 }
  0x3e   :  { %894 = vmatprep.mubr.msk.f32.mxu0 %vm135_vm0, %v119_v27  ;;  %952 = vmatpush3.msra.mxu1 %v103_v12 }
  0x3f   :  { %953 = vmatprep.subr.mxu1 %v1129_v0 }
  0x40   :  { %954 = vmatpush3.msra.mxu1 %v102_v13 }
  0x41   :  { %895 = vmatmul.mubr.msk.f32.gmra.mxu0 %vm135_vm0, %v120_v28  ;;  %958 = vmatprep.subr.mxu1 %v1129_v0 }
  0x42   :  { %897 = vmatprep.mubr.msk.f32.mxu0 %vm135_vm0, %v121_v29  ;;  %v667_v29 = vlaneseq }
  0x45   :  { %898 = vmatmul.mubr.msk.f32.gmra.mxu0 %vm135_vm0, %v122_v30  ;;  %v668_v30 = vshrl.u32 %v667_v29, 7 }
  0x46   :  { %900 = vmatprep.mubr.msk.f32.mxu0 %vm135_vm0, %v123_v31 }
  0x47   :  { %v669_v31 = vsub.s32 0, %v668_v30 }
  0x49   :  { %901 = vmatmul.mubr.msk.f32.gmra.mxu0 %vm135_vm0, %v124_v32 }
  0x4a   :  { %903 = vmatprep.mubr.msk.f32.mxu0 %vm135_vm0, %v125_v33 }
  0x4d   :  { %904 = vmatmul.mubr.msk.f32.gmra.mxu0 %vm135_vm0, %v126_v34 }
  0x4e   :  { %906 = vmatprep.mubr.msk.f32.mxu0 %vm135_vm0, %v127_v35  ;;  %v670_v35 = vrot.slane %v1281_v18, %v669_v31 }
  0x51   :  { %907 = vmatmul.mubr.msk.f32.gmra.mxu0 %vm135_vm0, %v128_v36 }
  0x52   :  { %909 = vmatprep.mubr.msk.f32.mxu0 %vm135_vm0, %v129_v37 }
  0x55   :  { %910 = vmatmul.mubr.msk.f32.gmra.mxu0 %vm135_vm0, %v130_v38  ;;  %v109_v38 = vld [vmem:[#allocation9 + $0x18] sm:$0xff] }
  0x56   :  { %944 = vmatprep.mubr.msk.f32.mxu0 %vm1131_vm2, %v1129_v0 }
  0xef   :  { %v402_v39 = vpop.f32.mrf.mxu1 }
  0xf1   :  { %v1351_v40 = vpop.f32.mrf.mxu1 }
  0xf7   :  { %v476_v41 = vpop.f32.mrf.mxu1 }
  0xf8   :  { %v481_v44 = vadd.f32 %v476_v41, %v402_v39  ;;  %v108_v39 = vld [vmem:[#allocation9 + $0x10] sm:$0xff]  ;;  %v106_v41 = vld [vmem:[#allocation9] sm:$0xff] }
  0xf9   :  { %v478_v45 = vpop.f32.mrf.mxu1  ;;  %v890_v49 = vpop.f32.mrf.mxu0 }
  0xfa   :  { %v1359_v46 = vadd.f32 %v478_v45, %v113_v42  ;;  %v482_v47 = vadd.f32 %v481_v44, %v110_v43 }
  0xfb   :  { %v250_v50 = vpop.f32.mrf.mxu0 }
  0xfc   :  { %651 = vrot.lane.b32.xlu1 %v1359_v46, %s1130_s3  ;;  %v484_v48 = vsel %vm483_vm1, %v482_v47, -inf }
  0xfd   :  { %485 = vmax.xlane.f32.xlu0 %v484_v48  ;;  %v893_v51 = vpop.f32.mrf.mxu0 }
  0xff   :  { %v260_v52 = vpop.f32.mrf.mxu0 }
 0x101   :  { %v896_v53 = vpop.f32.mrf.mxu0 }
 0x103   :  { %v270_v54 = vpop.f32.mrf.mxu0 }
 0x105   :  { %v899_v55 = vpop.f32.mrf.mxu0 }
 0x107   :  { %v280_v56 = vpop.f32.mrf.mxu0 }
 0x109   :  { %v902_v57 = vpop.f32.mrf.mxu0 }
 0x10b   :  { %v290_v58 = vpop.f32.mrf.mxu0 }
 0x10d   :  { %v905_v59 = vpop.f32.mrf.mxu0 }
 0x10f   :  { %v300_v60 = vpop.f32.mrf.mxu0 }
 0x111   :  { %v908_v61 = vpop.f32.mrf.mxu0 }
 0x113   :  { %v310_v62 = vpop.f32.mrf.mxu0 }
 0x115   :  { %v911_v63 = vpop.f32.mrf.mxu0 }
 0x116   :  { %913 = vmatpush3.msra.mxu0 %v911_v63 }
 0x117   :  { %v320_v1 = vpop.f32.mrf.mxu0  ;;  %914 = vmatprep.subr.mxu0 %v1129_v0 }
 0x118   :  { %915 = vmatpush3.msra.mxu0 %v320_v1 }
 0x119   :  { %916 = vmatprep.subr.mxu0 %v1129_v0 }
 0x11a   :  { %917 = vmatpush3.msra.mxu0 %v908_v61 }
 0x11b   :  { %918 = vmatprep.subr.mxu0 %v1129_v0 }
 0x11c   :  { %919 = vmatpush3.msra.mxu0 %v310_v62 }
 0x11d   :  { %920 = vmatprep.subr.mxu0 %v1129_v0 }
 0x11e   :  { %921 = vmatpush3.msra.mxu0 %v905_v59 }
 0x11f   :  { %922 = vmatprep.subr.mxu0 %v1129_v0 }
 0x120   :  { %923 = vmatpush3.msra.mxu0 %v300_v60 }
 0x121   :  { %924 = vmatprep.subr.mxu0 %v1129_v0 }
 0x122   :  { %925 = vmatpush3.msra.mxu0 %v902_v57 }
 0x123   :  { %926 = vmatprep.subr.mxu0 %v1129_v0 }
 0x124   :  { %927 = vmatpush3.msra.mxu0 %v290_v58 }
 0x125   :  { %928 = vmatprep.subr.mxu0 %v1129_v0 }
 0x126   :  { %929 = vmatpush3.msra.mxu0 %v899_v55 }
 0x127   :  { %930 = vmatprep.subr.mxu0 %v1129_v0 }
 0x128   :  { %931 = vmatpush3.msra.mxu0 %v280_v56 }
 0x129   :  { %932 = vmatprep.subr.mxu0 %v1129_v0 }
 0x12a   :  { %933 = vmatpush3.msra.mxu0 %v896_v53 }
 0x12b   :  { %934 = vmatprep.subr.mxu0 %v1129_v0 }
 0x12c   :  { %935 = vmatpush3.msra.mxu0 %v270_v54 }
 0x12d   :  { %936 = vmatprep.subr.mxu0 %v1129_v0 }
 0x12e   :  { %937 = vmatpush3.msra.mxu0 %v893_v51 }
 0x12f   :  { %938 = vmatprep.subr.mxu0 %v1129_v0 }
 0x130   :  { %939 = vmatpush3.msra.mxu0 %v260_v52 }
 0x131   :  { %940 = vmatprep.subr.mxu0 %v1129_v0 }
 0x132   :  { %941 = vmatpush3.msra.mxu0 %v890_v49 }
 0x133   :  { %942 = vmatprep.subr.mxu0 %v1129_v0 }
 0x134   :  { %943 = vmatpush3.msra.mxu0 %v250_v50 }
 0x16e   :  { %v652_v33 = vpop.permute.xlu1 %651 }
 0x186   :  { %v486_v2 = vpop.xlane.xlu0 %485 }
 0x187   :  { %v487_v3 = vsub.f32 %v482_v47, %v486_v2 }
 0x189   :  { %v488_v4 = vmul.f32 1.442695, %v487_v3 }
 0x18b   :  { %982 = vpow2.f32 %v488_v4 }
 0x198   :  { %v983_v5 = vpop.eup %982 }
 0x199   :  { %v490_v6 = vsel %vm483_vm1, %v983_v5, 0.0 }
 0x19a   :  { %491 = vadd.xlane.f32.xlu0 %v490_v6 }
 0x223   :  { %v492_v7 = vpop.xlane.xlu0 %491 }
 0x224   :  { %984 = vrcp.f32 %v492_v7 }
 0x231   :  { %v985_v8 = vpop.eup %984 }
 0x232   :  { %v494_v9 = vmul.f32 %v985_v8, %v983_v5 }
 0x234   :  { %945 = vmatmul.mubr.f32.vlgmr.msra.gmra.mxu0 %v494_v9  ;;  %495 = vst [vmem:[#allocation11] sm:$0x1] %v494_v9 }
 0x2f4   :  { %v562_v15 = vpop.f32.mrf.mxu0 }
 0x2f5   :  { %v566_v16 = vadd.f32 %v562_v15, %v1351_v40  ;;  %v107_v40 = vld [vmem:[#allocation9 + $0x8] sm:$0xff] }
 0x2f6   :  { %v946_v17 = vpop.f32.mrf.mxu0 }
 0x2f7   :  { %v567_v19 = vadd.f32 %v566_v16, %v114_v14 }
 0x2f9   :  { %v568_v20 = vmax.f32 %v567_v19, 0.0 }
 0x2fb   :  { %956 = vmatmul.mubr.msk.f32.vlgmr.msra.gmra.mxu1 %vm135_vm0, %v568_v20 }
 0x2fc   :  { %966 = vmatprep.mubr.msk.f32.mxu1 %vm1131_vm2, %v1129_v0  ;;  %959 = vmatpush3.msra.mxu1 %v109_v38 }
 0x2fd   :  { %960 = vmatprep.subr.mxu1 %v1129_v0 }
 0x2fe   :  { %961 = vmatpush3.msra.mxu1 %v108_v39 }
 0x2ff   :  { %962 = vmatprep.subr.mxu1 %v1129_v0 }
 0x300   :  { %963 = vmatpush3.msra.mxu1 %v107_v40 }
 0x301   :  { %964 = vmatprep.subr.mxu1 %v1129_v0  ;;  %v111_v0 = vld [vmem:[%s1428_s9 + $0x1] sm:$0x1]  ;;  %s1060_s9 = scalar_lea.vmem %s785_s23, 32 }
 0x302   :  { %965 = vmatpush3.msra.mxu1 %v106_v41  ;;  %p1062_p3 = scmp.lt.s32.totalorder %s1060_s9, %s1056_s24 }
 0x304   :  { %p1063_p4 = por %p1062_p3, %p1061_p2 }
 0x306   :  { %p1064_p5 = pnand %p1063_p4, %p1057_p1 }
 0x3bb   :  { %v638_v22 = vpop.f32.mrf.mxu1 }
 0x3bc   :  { %v639_v23 = vadd.f32 %v638_v22, %v112_v21 }
 0x3bd   :  { %v957_v24 = vpop.f32.mrf.mxu1 }
 0x3be   :  { %v643_v25 = vadd.f32 %v1359_v46, %v639_v23 }
 0x3c0   :  { %v831_v26 = vmul.f32 -1.442695, %v643_v25 }
 0x3c2   :  { %986 = vpow2.f32 %v831_v26 }
 0x3cf   :  { %v987_v27 = vpop.eup %986 }
 0x3d0   :  { %v647_v28 = vadd.f32 1.0, %v987_v27 }
 0x3d2   :  { %988 = vrcp.f32 %v647_v28 }
 0x3df   :  { %v989_v32 = vpop.eup %988 }
 0x3e0   :  { %v654_v34 = vmul.f32 %v989_v32, %v652_v33  ;;  %v661_v43 = vsub.f32 1.0, %v989_v32 }
 0x3e2   :  { %656 = vrot.lane.b32.xlu1 %v654_v34, %s1130_s3 }
 0x3e6   :  { %671 = vrot.lane.b32.xlu1 %v670_v35, %s1132_s10 }
 0x454   :  { %v657_v36 = vpop.permute.xlu1 %656 }
 0x455   :  { %v659_v37 = vadd.f32 %v657_v36, %v639_v23 }
 0x457   :  { %990 = vtanh.f32 %v659_v37 }
 0x458   :  { %v672_v42 = vpop.permute.xlu1 %671 }
 0x459   :  { %v674_v45 = vmul.f32 %v989_v32, %v672_v42 }
 0x464   :  { %v991_v18 = vpop.eup %990 }
 0x465   :  { %663 = vrot.lane.b32.xlu0 %v991_v18, %s1133_s11 }
 0x4d7   :  { %v664_v44 = vpop.permute.xlu0 %663 }
 0x4d8   :  { %v666_v46 = vmul.f32 %v664_v44, %v661_v43 }
 0x4da   :  { %v675_v47 = vadd.f32 %v674_v45, %v666_v46 }
 0x4dc   :  { %677 = vrot.lane.b32.xlu1 %v675_v47, %s1133_s11 }
 0x54e   :  { %v678_v48 = vpop.permute.xlu1 %677 }
 0x54f   :  { %767 = vst.msk [vmem:[#allocation13] sm:$0x1] %vm766_vm3, %v678_v48  ;;  %967 = vmatmul.mubr.msk.f32.vlgmr.msra.gmra.mxu1 %vm135_vm0, %v678_v48 }
 0x60f   :  { %v747_v49 = vpop.f32.mrf.mxu1 }
 0x610   :  { %v748_v50 = vadd.f32 %v747_v49, %v111_v0 }
 0x611   :  { %v968_v51 = vpop.f32.mrf.mxu1 }
 0x612   :  { %v751_v52 = vsel %vm483_vm1, %v748_v50, -inf }
 0x613   :  { %752 = vmax.xlane.f32.xlu1 %v751_v52 }
 0x69c   :  { %v753_v53 = vpop.xlane.xlu1 %752 }
 0x69d   :  { %v754_v54 = vsub.f32 %v748_v50, %v753_v53 }
 0x69f   :  { %v755_v55 = vmul.f32 1.442695, %v754_v54 }
 0x6a1   :  { %992 = vpow2.f32 %v755_v55 }
 0x6ae   :  { %v993_v56 = vpop.eup %992 }
 0x6af   :  { %v757_v57 = vsel %vm483_vm1, %v993_v56, 0.0 }
 0x6b0   :  { %758 = vadd.xlane.f32.xlu0 %v757_v57 }
 0x6b1   :  { %1067 = shalt.err (!%p1064_p5)
}
 0x6b2   :  { %787 = dma.vmem_to_hbm [thread:$0]  %s785_s23, 16, %s1432_s13, [#allocation12]  }
 0x6b3   :  { %s1135_s27 = smov [#allocation13]  }
 0x6b4   :  { %s794_s5 = sshll.u32 %s1135_s27, 4  ;;  %s795_s5 = int_to_ptr.vmem [resolvable:$true] %s794_s5 }
 0x6b5   :  { %s1076_s2 = scalar_lea.vmem %s795_s5, 16  ;;  %s1080_s7 = scalar_lea.vmem %s795_s5, 32 }
 0x6b6   :  { %p1077_p6 = scmp.ne.s32.totalorder %s795_s5, %s1076_s2  ;;  %p1081_p7 = scmp.lt.s32.totalorder %s795_s5, %s795_s5 }
 0x6b7   :  { %p1082_p8 = scmp.lt.s32.totalorder %s1080_s7, %s1076_s2 }
 0x6b9   :  { %p1083_p9 = por %p1082_p8, %p1081_p7 }
 0x6bb   :  { %p1084_p10 = pnand %p1083_p9, %p1077_p6 }
 0x6bd   :  { %1087 = shalt.err (!%p1084_p10)
}
 0x6be   :  { %797 = dma.vmem_to_hbm [thread:$0]  %s795_s5, 16, %s1433_s14, [#allocation12]  }
 0x6bf   :  { %s1136_s13 = smov [#allocation10]  }
 0x6c0   :  { %s774_s29 = sshll.u32 %s1136_s13, 4  ;;  %s775_s29 = int_to_ptr.vmem [resolvable:$true] %s774_s29 }
 0x6c1   :  { %s1096_s30 = scalar_lea.vmem %s775_s29, 16  ;;  %s1100_s15 = scalar_lea.vmem %s775_s29, 32 }
 0x6c2   :  { %p1097_p11 = scmp.ne.s32.totalorder %s775_s29, %s1096_s30  ;;  %p1101_p12 = scmp.lt.s32.totalorder %s775_s29, %s775_s29 }
 0x6c3   :  { %p1102_p13 = scmp.lt.s32.totalorder %s1100_s15, %s1096_s30 }
 0x6c5   :  { %p1103_p0 = por %p1102_p13, %p1101_p12 }
 0x6c7   :  { %p1104_p1 = pnand %p1103_p0, %p1097_p11 }
 0x739   :  { %v759_v58 = vpop.xlane.xlu0 %758 }
 0x73a   :  { %994 = vlog2.f32 %v759_v58 }
 0x747   :  { %v995_v59 = vpop.eup %994 }
 0x748   :  { %v761_v60 = vmul.f32 0.6931472, %v995_v59 }
 0x74a   :  { %v762_v61 = vadd.f32 %v761_v60, %v753_v53 }
 0x74c   :  { %v763_v62 = vsub.f32 %v748_v50, %v762_v61 }
 0x74e   :  { %764 = vst [vmem:[#allocation10] sm:$0x1] %v763_v62 }
 0x74f   :  { %1107 = shalt.err (!%p1104_p1)
}
 0x750   :  { %777 = dma.vmem_to_hbm [thread:$0]  %s775_s29, 16, %s1431_s12, [#allocation6]  }
 0x751   :  { %1120 = dma.done.wait [#allocation6], 16  }
 0x752   :  { %1121 = vsyncadd [#allocation6], 4294967280 }
 0x753   :  { %1122 = dma.done.wait [#allocation12], 32  }
 0x754   :  { %1123 = vsyncadd [#allocation12], 4294967264 }
 0x755   :  { %807 = vsyncpa [#allocation5], 1 }
 0x756   :  { %808 = vsyncpa [#allocation8], 1 }
 0x757   :  { %809 = vsyncpa [#allocation6], 1 }
 0x758   :  { %810 = vsyncpa [#allocation12], 1 }

</bundles_post_ra>
